<compile_context>
chip_gen: v6e
topology: v6e:2x2x1
jax: 0.10.0
libtpu: 0.0.40
codegen_flags: <defaults>
</compile_context>

<pallas_src>
import functools

import jax
import jax.numpy as jnp
from jax import lax
from jax.experimental import pallas as pl
from jax.experimental.pallas import tpu as pltpu


def _round_up(x, m):
    return (x + m - 1) // m * m


def _pairwise_hard_kernel(xr_ref, xc_ref, lab_col_ref, lab_row_ref,
                          fp_ref, cn_ref, max_acc, min_acc, *, b_real):
    """One (tm x tn) tile of the pairwise distance matrix + online hard mining."""
    i = pl.program_id(0)          # row-tile index ("parallel")
    j = pl.program_id(1)          # col-tile index (reduction axis, last, "arbitrary")
    tm = xr_ref.shape[0]
    tn = xc_ref.shape[0]

    @pl.when(j == 0)
    def _init():
        max_acc[...] = jnp.zeros_like(max_acc)            # no positive -> 0
        min_acc[...] = jnp.full_like(min_acc, jnp.inf)    # no negative -> +inf

    xr = xr_ref[...]                                      # (tm, Dp) input dtype
    xc = xc_ref[...]                                      # (tn, Dp)
    xr_f = xr.astype(jnp.float32)
    xc_f = xc.astype(jnp.float32)
    sq_r = jnp.sum(xr_f * xr_f, axis=1, keepdims=True)    # (tm, 1)
    sq_c = jnp.sum(xc_f * xc_f, axis=1, keepdims=True)    # (tn, 1)

    # MXU gram matrix in the input dtype, f32 accumulation.
    gram = lax.dot_general(xr, xc, (((1,), (1,)), ((), ())),
                           preferred_element_type=jnp.float32)   # (tm, tn)
    # Squared distances (sqrt deferred past the reductions).
    d2 = jnp.maximum(sq_r + jnp.transpose(sq_c) - 2.0 * gram, 0.0)

    lab_r = lab_col_ref[...]                              # (tm, 1) int32
    lab_c = lab_row_ref[...]                              # (1, tn) int32
    same = lab_r == lab_c                                 # (tm, tn) bool

    # Global indices: diagonal mask offset by the tile origin + padded-column
    # validity.
    row_idx = i * tm + lax.broadcasted_iota(jnp.int32, (tm, tn), 0)
    col_idx = j * tn + lax.broadcasted_iota(jnp.int32, (tm, tn), 1)
    not_diag = row_idx != col_idx
    col_valid = col_idx < b_real

    pos = jnp.logical_and(jnp.logical_and(same, not_diag), col_valid)
    neg = jnp.logical_and(jnp.logical_not(same), col_valid)

    # Fused-mask online reductions on squared distances.
    max_acc[...] = jnp.maximum(
        max_acc[...],
        jnp.max(jnp.where(pos, d2, 0.0), axis=1, keepdims=True))
    min_acc[...] = jnp.minimum(
        min_acc[...],
        jnp.min(jnp.where(neg, d2, jnp.inf), axis=1, keepdims=True))

    @pl.when(j == pl.num_programs(1) - 1)
    def _finalize():
        fp_ref[...] = jnp.sqrt(max_acc[...])              # only 2*tm sqrts / row tile
        cn_ref[...] = jnp.sqrt(min_acc[...])


def _aggregate_kernel(fp_ref, cn_ref, loss_ref, fpm_ref, cnm_ref,
                      *, margin, agr, b_real):
    """O(B) epilogue: hinge + aggregation; scalar results go straight to SMEM."""
    fp = fp_ref[...]                                      # (Bp, 1) f32
    cn = cn_ref[...]
    bp = fp.shape[0]
    valid = lax.broadcasted_iota(jnp.int32, (bp, 1), 0) < b_real
    inv_b = 1.0 / float(b_real)

    loss = jnp.maximum(fp - cn + margin, 0.0)
    if agr == 'mean':
        loss_out = jnp.sum(jnp.where(valid, loss, 0.0)) * inv_b
    else:
        loss_out = jnp.max(jnp.where(valid, loss, -jnp.inf))

    loss_ref[0, 0] = loss_out
    fpm_ref[0, 0] = jnp.sum(jnp.where(valid, fp, 0.0)) * inv_b
    cnm_ref[0, 0] = jnp.sum(jnp.where(valid, cn, 0.0)) * inv_b


def triplet_loss_batch_hard(embeddings, labels, margin=0.0,
                            loss_agr_policy='mean', block=256):
    """Returns (loss, furthest_positive.mean(), closest_negative.mean())."""
    B, D = embeddings.shape
    Dp = _round_up(D, 128)                     # lane-dense feature dim (zeros are free)
    # Square tiles.  If more than one tile is needed, the tile must be a
    # multiple of 128 so the (1, tile) label-row block is layout-legal.
    tile = min(block, _round_up(B, 8))
    if tile < B:
        tile = _round_up(tile, 128)
    Bp = _round_up(B, tile)

    emb_p = jnp.pad(embeddings, ((0, Bp - B), (0, Dp - D)))
    lab_p = jnp.pad(labels.astype(jnp.int32), (0, Bp - B), constant_values=-1)
    lab_col = lab_p.reshape(Bp, 1)
    lab_row = lab_p.reshape(1, Bp)

    n_i = Bp // tile
    n_j = Bp // tile

    fp, cn = pl.pallas_call(
        functools.partial(_pairwise_hard_kernel, b_real=B),
        out_shape=(jax.ShapeDtypeStruct((Bp, 1), jnp.float32),
                   jax.ShapeDtypeStruct((Bp, 1), jnp.float32)),
        grid=(n_i, n_j),
        in_specs=[pl.BlockSpec((tile, Dp), lambda i, j: (i, 0)),   # row emb tile
                  pl.BlockSpec((tile, Dp), lambda i, j: (j, 0)),   # col emb tile
                  pl.BlockSpec((tile, 1), lambda i, j: (i, 0)),    # row labels
                  pl.BlockSpec((1, tile), lambda i, j: (0, j))],   # col labels
        out_specs=(pl.BlockSpec((tile, 1), lambda i, j: (i, 0)),
                   pl.BlockSpec((tile, 1), lambda i, j: (i, 0))),
        scratch_shapes=[pltpu.VMEM((tile, 1), jnp.float32),        # running max (pos)
                        pltpu.VMEM((tile, 1), jnp.float32)],       # running min (neg)
        compiler_params=pltpu.CompilerParams(
            dimension_semantics=("parallel", "arbitrary"),
            # Tiles fit comfortably under the 32 MiB scoped default on all
            # generations (and under v7x's 64 MiB physical VMEM).
            vmem_limit_bytes=32 * 1024 * 1024),
    )(emb_p, emb_p, lab_col, lab_row)

    loss, fpm, cnm = pl.pallas_call(
        functools.partial(_aggregate_kernel, margin=float(margin),
                          agr=loss_agr_policy, b_real=B),
        out_shape=(jax.ShapeDtypeStruct((1, 1), jnp.float32),
                   jax.ShapeDtypeStruct((1, 1), jnp.float32),
                   jax.ShapeDtypeStruct((1, 1), jnp.float32)),
        in_specs=[pl.BlockSpec((Bp, 1), lambda: (0, 0)),
                  pl.BlockSpec((Bp, 1), lambda: (0, 0))],
        out_specs=(pl.BlockSpec(memory_space=pltpu.MemorySpace.SMEM),
                   pl.BlockSpec(memory_space=pltpu.MemorySpace.SMEM),
                   pl.BlockSpec(memory_space=pltpu.MemorySpace.SMEM)),
    )(fp, cn)

    return loss[0, 0], fpm[0, 0], cnm[0, 0]


def _reference(embeddings, labels, margin=0.0, loss_agr_policy='mean'):
    """Pure-JAX reference mirroring the PyTorch module."""
    diff = embeddings[:, None, :] - embeddings[None, :, :]
    dists = jnp.sqrt(jnp.sum(diff * diff, axis=-1))
    same = labels[:, None] == labels[None, :]
    eye = jnp.eye(labels.shape[0], dtype=bool)
    positive_mask = jnp.logical_and(same, ~eye).astype(jnp.float32)
    dists_negative = jnp.where(same, jnp.inf, dists)
    furthest_positive = jnp.max(dists * positive_mask, axis=1)
    closest_negative = jnp.min(dists_negative, axis=1)
    loss = jnp.maximum(furthest_positive - closest_negative + margin, 0.0)
    agg = jnp.mean(loss) if loss_agr_policy == 'mean' else jnp.max(loss)
    return agg, jnp.mean(furthest_positive), jnp.mean(closest_negative)


if __name__ == "__main__":
    key = jax.random.PRNGKey(0)
    k1, k2 = jax.random.split(key)

    # Case 1: tiny single-tile problem (B=8, D=32), both aggregation policies.
    B1, D1 = 8, 32
    emb1 = jax.random.normal(k1, (B1, D1), dtype=jnp.float32)
    lab1 = jnp.array([0, 0, 1, 1, 2, 2, 3, 3], dtype=jnp.int32)
    for agr in ('mean', 'max'):
        out = triplet_loss_batch_hard(emb1, lab1, margin=0.2, loss_agr_policy=agr)
        out = jax.block_until_ready(out)
        ref = _reference(emb1, lab1, margin=0.2, loss_agr_policy=agr)
        for o, r in zip(out, ref):
            assert jnp.allclose(o, r, atol=1e-3, rtol=1e-3), (agr, o, r)

    # Case 2: exercise the tiled path (grid=(2,2)) with row/col/feature padding:
    # B=144 padded to 256 with 128x128 tiles, D=72 padded to 128 lanes.
    B2, D2 = 144, 72
    emb2 = jax.random.normal(k2, (B2, D2), dtype=jnp.float32)
    lab2 = jnp.arange(B2, dtype=jnp.int32) % 9
    out2 = triplet_loss_batch_hard(emb2, lab2, margin=0.3,
                                   loss_agr_policy='mean', block=128)
    out2 = jax.block_until_ready(out2)
    ref2 = _reference(emb2, lab2, margin=0.3, loss_agr_policy='mean')
    for o, r in zip(out2, ref2):
        assert jnp.allclose(o, r, atol=1e-3, rtol=1e-3), (o, r)

    print("KERNEL_OK")
</pallas_src>

<mosaic_0001>
module attributes {stable_mosaic.version = 11 : i64} {
  func.func @_pairwise_hard_kernel(%arg0: i32, %arg1: i32, %arg2: memref<8x128xf32, #tpu.memory_space<vmem>>, %arg3: memref<8x128xf32, #tpu.memory_space<vmem>>, %arg4: memref<8x1xi32, #tpu.memory_space<vmem>>, %arg5: memref<1x8xi32, #tpu.memory_space<vmem>>, %arg6: memref<8x1xf32, #tpu.memory_space<vmem>>, %arg7: memref<8x1xf32, #tpu.memory_space<vmem>>, %arg8: memref<8x1xf32, #tpu.memory_space<vmem>>, %arg9: memref<8x1xf32, #tpu.memory_space<vmem>>) attributes {dimension_semantics = [#tpu.dimension_semantics<parallel>, #tpu.dimension_semantics<arbitrary>], iteration_bounds = array<i64: 1, 1>, scalar_prefetch = 0 : i64, scratch_operands = 2 : i64, tpu.core_type = #tpu.core_type<tc>, window_params = [{transform_indices = @transform_0, window_bounds = array<i64: 8, 128>}, {transform_indices = @transform_1, window_bounds = array<i64: 8, 128>}, {transform_indices = @transform_2, window_bounds = array<i64: 8, 1>}, {transform_indices = @transform_3, window_bounds = array<i64: 1, 8>}, {transform_indices = @transform_4, window_bounds = array<i64: 8, 1>}, {transform_indices = @transform_5, window_bounds = array<i64: 8, 1>}]} {
    %c0_i32 = arith.constant 0 : i32
    %0 = arith.cmpi eq, %arg1, %c0_i32 : i32
    %1 = arith.extui %0 : i1 to i32
    %c0_i32_0 = arith.constant 0 : i32
    %2 = arith.cmpi ne, %1, %c0_i32_0 : i32
    scf.if %2 {
      %cst_29 = arith.constant 0.000000e+00 : f32
      %58 = vector.broadcast %cst_29 : f32 to vector<8x1xf32>
      %c0_30 = arith.constant 0 : index
      %c0_31 = arith.constant 0 : index
      %59 = vector.load %arg8[%c0_30, %c0_31] : memref<8x1xf32, #tpu.memory_space<vmem>>, vector<8x1xf32>
      tpu.vector_store %arg8[%c0_30, %c0_31], %58 {strides = array<i32>} : memref<8x1xf32, #tpu.memory_space<vmem>>, vector<8x1xf32>,
      %cst_32 = arith.constant 0x7F800000 : f32
      %60 = vector.broadcast %cst_32 : f32 to vector<8x1xf32>
      %c0_33 = arith.constant 0 : index
      %c0_34 = arith.constant 0 : index
      %61 = vector.load %arg9[%c0_33, %c0_34] : memref<8x1xf32, #tpu.memory_space<vmem>>, vector<8x1xf32>
      tpu.vector_store %arg9[%c0_33, %c0_34], %60 {strides = array<i32>} : memref<8x1xf32, #tpu.memory_space<vmem>>, vector<8x1xf32>,
    } else {
    }
    %c0 = arith.constant 0 : index
    %c0_1 = arith.constant 0 : index
    %3 = vector.load %arg2[%c0, %c0_1] : memref<8x128xf32, #tpu.memory_space<vmem>>, vector<8x128xf32>
    %c0_2 = arith.constant 0 : index
    %c0_3 = arith.constant 0 : index
    %4 = vector.load %arg3[%c0_2, %c0_3] : memref<8x128xf32, #tpu.memory_space<vmem>>, vector<8x128xf32>
    %5 = arith.mulf %3, %3 : vector<8x128xf32>
    %cst = arith.constant dense<0.000000e+00> : vector<8xf32>
    %6 = vector.multi_reduction <add>, %5, %cst [1] : vector<8x128xf32> to vector<8xf32>
    %7 = vector.shape_cast %6 : vector<8xf32> to vector<8x1xf32>
    %8 = arith.mulf %4, %4 : vector<8x128xf32>
    %cst_4 = arith.constant dense<0.000000e+00> : vector<8xf32>
    %9 = vector.multi_reduction <add>, %8, %cst_4 [1] : vector<8x128xf32> to vector<8xf32>
    %10 = vector.shape_cast %9 : vector<8xf32> to vector<8x1xf32>
    %cst_5 = arith.constant dense<0.000000e+00> : vector<8x8xf32>
    %11 = tpu.matmul %3, %4, %cst_5 {dimension_numbers = #tpu.dot_dimension_numbers<[1], [1], [0], [0], [0, 0, 1, 0], [], []>} : vector<8x128xf32>, vector<8x128xf32>, vector<8x8xf32> -> vector<8x8xf32>
    %12 = tpu.transpose %10, [1, 0] : vector<8x1xf32> -> vector<1x8xf32>
    %13 = vector.broadcast %7 : vector<8x1xf32> to vector<8x8xf32>
    %14 = vector.broadcast %12 : vector<1x8xf32> to vector<8x8xf32>
    %15 = arith.addf %13, %14 : vector<8x8xf32>
    %cst_6 = arith.constant 2.000000e+00 : f32
    %16 = vector.broadcast %cst_6 : f32 to vector<8x8xf32>
    %17 = arith.mulf %16, %11 : vector<8x8xf32>
    %18 = arith.subf %15, %17 : vector<8x8xf32>
    %cst_7 = arith.constant 0.000000e+00 : f32
    %19 = vector.broadcast %cst_7 : f32 to vector<8x8xf32>
    %20 = arith.maximumf %18, %19 : vector<8x8xf32>
    %c0_8 = arith.constant 0 : index
    %c0_9 = arith.constant 0 : index
    %21 = vector.load %arg4[%c0_8, %c0_9] : memref<8x1xi32, #tpu.memory_space<vmem>>, vector<8x1xi32>
    %c0_10 = arith.constant 0 : index
    %c0_11 = arith.constant 0 : index
    %22 = vector.load %arg5[%c0_10, %c0_11] : memref<1x8xi32, #tpu.memory_space<vmem>>, vector<1x8xi32>
    %23 = vector.broadcast %21 : vector<8x1xi32> to vector<8x8xi32>
    %24 = vector.broadcast %22 : vector<1x8xi32> to vector<8x8xi32>
    %25 = arith.cmpi eq, %23, %24 : vector<8x8xi32>
    %c8_i32 = arith.constant 8 : i32
    %26 = arith.muli %arg0, %c8_i32 : i32
    %27 = tpu.iota {dimensions = array<i32: 0>} : vector<8x8xi32>
    %28 = vector.broadcast %26 : i32 to vector<8x8xi32>
    %29 = arith.addi %28, %27 : vector<8x8xi32>
    %c8_i32_12 = arith.constant 8 : i32
    %30 = arith.muli %arg1, %c8_i32_12 : i32
    %31 = tpu.iota {dimensions = array<i32: 1>} : vector<8x8xi32>
    %32 = vector.broadcast %30 : i32 to vector<8x8xi32>
    %33 = arith.addi %32, %31 : vector<8x8xi32>
    %34 = arith.cmpi ne, %29, %33 : vector<8x8xi32>
    %c8_i32_13 = arith.constant 8 : i32
    %35 = vector.broadcast %c8_i32_13 : i32 to vector<8x8xi32>
    %36 = arith.cmpi slt, %33, %35 : vector<8x8xi32>
    %37 = arith.andi %25, %34 : vector<8x8xi1>
    %38 = arith.andi %37, %36 : vector<8x8xi1>
    %cst_14 = arith.constant dense<true> : vector<8x8xi1>
    %39 = arith.xori %25, %cst_14 : vector<8x8xi1>
    %40 = arith.andi %39, %36 : vector<8x8xi1>
    %c0_15 = arith.constant 0 : index
    %c0_16 = arith.constant 0 : index
    %41 = vector.load %arg8[%c0_15, %c0_16] : memref<8x1xf32, #tpu.memory_space<vmem>>, vector<8x1xf32>
    %cst_17 = arith.constant 0.000000e+00 : f32
    %42 = vector.broadcast %cst_17 : f32 to vector<8x8xf32>
    %43 = arith.select %38, %20, %42 : vector<8x8xi1>, vector<8x8xf32>
    %cst_18 = arith.constant dense<0xFF800000> : vector<8xf32>
    %44 = vector.multi_reduction <maximumf>, %43, %cst_18 [1] : vector<8x8xf32> to vector<8xf32>
    %45 = vector.shape_cast %44 : vector<8xf32> to vector<8x1xf32>
    %46 = arith.maximumf %41, %45 : vector<8x1xf32>
    %c0_19 = arith.constant 0 : index
    %c0_20 = arith.constant 0 : index
    %47 = vector.load %arg8[%c0_19, %c0_20] : memref<8x1xf32, #tpu.memory_space<vmem>>, vector<8x1xf32>
    tpu.vector_store %arg8[%c0_19, %c0_20], %46 {strides = array<i32>} : memref<8x1xf32, #tpu.memory_space<vmem>>, vector<8x1xf32>,
    %c0_21 = arith.constant 0 : index
    %c0_22 = arith.constant 0 : index
    %48 = vector.load %arg9[%c0_21, %c0_22] : memref<8x1xf32, #tpu.memory_space<vmem>>, vector<8x1xf32>
    %cst_23 = arith.constant 0x7F800000 : f32
    %49 = vector.broadcast %cst_23 : f32 to vector<8x8xf32>
    %50 = arith.select %40, %20, %49 : vector<8x8xi1>, vector<8x8xf32>
    %cst_24 = arith.constant dense<0x7F800000> : vector<8xf32>
    %51 = vector.multi_reduction <minimumf>, %50, %cst_24 [1] : vector<8x8xf32> to vector<8xf32>
    %52 = vector.shape_cast %51 : vector<8xf32> to vector<8x1xf32>
    %53 = arith.minimumf %48, %52 : vector<8x1xf32>
    %c0_25 = arith.constant 0 : index
    %c0_26 = arith.constant 0 : index
    %54 = vector.load %arg9[%c0_25, %c0_26] : memref<8x1xf32, #tpu.memory_space<vmem>>, vector<8x1xf32>
    tpu.vector_store %arg9[%c0_25, %c0_26], %53 {strides = array<i32>} : memref<8x1xf32, #tpu.memory_space<vmem>>, vector<8x1xf32>,
    %c0_i32_27 = arith.constant 0 : i32
    %55 = arith.cmpi eq, %arg1, %c0_i32_27 : i32
    %56 = arith.extui %55 : i1 to i32
    %c0_i32_28 = arith.constant 0 : i32
    %57 = arith.cmpi ne, %56, %c0_i32_28 : i32
    scf.if %57 {
      %c0_29 = arith.constant 0 : index
      %c0_30 = arith.constant 0 : index
      %58 = vector.load %arg8[%c0_29, %c0_30] : memref<8x1xf32, #tpu.memory_space<vmem>>, vector<8x1xf32>
      %59 = math.sqrt %58 : vector<8x1xf32>
      %c0_31 = arith.constant 0 : index
      %c0_32 = arith.constant 0 : index
      %60 = vector.load %arg6[%c0_31, %c0_32] : memref<8x1xf32, #tpu.memory_space<vmem>>, vector<8x1xf32>
      tpu.vector_store %arg6[%c0_31, %c0_32], %59 {strides = array<i32>} : memref<8x1xf32, #tpu.memory_space<vmem>>, vector<8x1xf32>,
      %c0_33 = arith.constant 0 : index
      %c0_34 = arith.constant 0 : index
      %61 = vector.load %arg9[%c0_33, %c0_34] : memref<8x1xf32, #tpu.memory_space<vmem>>, vector<8x1xf32>
      %62 = math.sqrt %61 : vector<8x1xf32>
      %c0_35 = arith.constant 0 : index
      %c0_36 = arith.constant 0 : index
      %63 = vector.load %arg7[%c0_35, %c0_36] : memref<8x1xf32, #tpu.memory_space<vmem>>, vector<8x1xf32>
      tpu.vector_store %arg7[%c0_35, %c0_36], %62 {strides = array<i32>} : memref<8x1xf32, #tpu.memory_space<vmem>>, vector<8x1xf32>,
    } else {
    }
    return
  }
  func.func @transform_0(%arg0: i32, %arg1: i32) -> (i32, i32) {
    %c0_i32 = arith.constant 0 : i32
    %c0_i32_0 = arith.constant 0 : i32
    return %arg0, %c0_i32 : i32, i32
  }
  func.func @transform_1(%arg0: i32, %arg1: i32) -> (i32, i32) {
    %c0_i32 = arith.constant 0 : i32
    %c0_i32_0 = arith.constant 0 : i32
    return %arg1, %c0_i32 : i32, i32
  }
  func.func @transform_2(%arg0: i32, %arg1: i32) -> (i32, i32) {
    %c0_i32 = arith.constant 0 : i32
    %c0_i32_0 = arith.constant 0 : i32
    return %arg0, %c0_i32 : i32, i32
  }
  func.func @transform_3(%arg0: i32, %arg1: i32) -> (i32, i32) {
    %c0_i32 = arith.constant 0 : i32
    %c0_i32_0 = arith.constant 0 : i32
    return %c0_i32, %arg1 : i32, i32
  }
  func.func @transform_4(%arg0: i32, %arg1: i32) -> (i32, i32) {
    %c0_i32 = arith.constant 0 : i32
    %c0_i32_0 = arith.constant 0 : i32
    return %arg0, %c0_i32 : i32, i32
  }
  func.func @transform_5(%arg0: i32, %arg1: i32) -> (i32, i32) {
    %c0_i32 = arith.constant 0 : i32
    %c0_i32_0 = arith.constant 0 : i32
    return %arg0, %c0_i32 : i32, i32
  }
}

</mosaic_0001>

<bundles_post_ra>
// kernel: tpu_custom_call.1
= control target key start
LH: loop header
LB: loop body
LE: loop exit
PB: predicated region body
PF: predicated region fallthrough
CT: control target
= control target key end

     0   :  { %11 = vsyncpa [#allocation5], 0  ;;  %s270_s18 = smov [#allocation4]   ;;  %s330_s0 = inlined_call_operand.vmem [shape: f32[8,128], index: 0, kind: input, shape index: {}]   ;;  %s331_s1 = inlined_call_operand.hbm [shape: f32[8,128], index: 1, kind: input, shape index: {}]   ;;  %s332_s2 = inlined_call_operand.vmem [shape: s32[8,1], index: 2, kind: input, shape index: {}]   ;;  %s333_s3 = inlined_call_operand.vmem [shape: s32[1,8], index: 3, kind: input, shape index: {}]   ;;  %s334_s4 = inlined_call_operand.vmem [shape: f32[8,1], index: 4, kind: output, shape index: {0}]   ;;  %s335_s5 = inlined_call_operand.vmem [shape: f32[8,1], index: 5, kind: output, shape index: {1}]  }
   0x1   :  { %s20_s19 = sshll.u32 %s270_s18, 4  ;;  %s21_s19 = int_to_ptr.vmem [resolvable:$true] %s20_s19 }
   0x2   :  { %s256_s20 = scalar_lea.vmem %s21_s19, 128  ;;  %p261_p1 = scmp.lt.s32.totalorder %s21_s19, %s21_s19 }
   0x3   :  { %p257_p0 = scmp.ne.s32.totalorder %s21_s19, %s256_s20  ;;  %p262_p2 = scmp.lt.s32.totalorder %s256_s20, %s256_s20 }
   0x5   :  { %p263_p3 = por %p262_p2, %p261_p1 }
   0x7   :  { %p264_p4 = pnand %p263_p3, %p257_p0 }
   0x9   :  { %267 = shalt.err (!%p264_p4)
}
   0xa   :  { %23 = dma.hbm_to_vmem [thread:$0]  %s331_s1, 128, %s21_s19, [#allocation5]  }
   0xb   :  { %268 = dma.done.wait [#allocation5], 128  }
   0xc   :  { %269 = vsyncadd [#allocation5], 4294967168  ;;  %vm35_vm0 = vcmask 7168   ;;  %v271_v0 = vmov 0.0   ;;  %vm272_vm1 = vmmov 0   ;;  %v273_v1 = vmov 0  }
   0xd   :  { %36 = vst.msk [vmem:[#allocation2] sm:$0xff] %vm35_vm0, %v271_v0  ;;  %231 = vmatprep.subr.mxu0 %v271_v0  ;;  %233 = vmatprep.mubr.msk.f32.mxu0 %vm272_vm1, %v271_v0  ;;  %v39_v2 = vld [vmem:[#allocation4] sm:$0xff]  ;;  %v156_v3 = vld [vmem:[%s332_s2] sm:$0xff]  ;;  %v148_v10 = vlaneseq  ;;  %vm274_vm6 = vmmov 1   ;;  %vm184_vm8 = vcmask 64512   ;;  %v275_v27 = vmov inf  }
   0xe   :  { %242 = vset.pattern.permute.xlu1 %v273_v1  ;;  %243 = vset.pattern.permute.xlu0 %v273_v1  ;;  %v43_v4 = vmul.f32 %v39_v2, %v39_v2  ;;  %v38_v5 = vld [vmem:[%s330_s0] sm:$0xff]  ;;  %37 = vst.msk [vmem:[#allocation3] sm:$0xff] %vm35_vm0, %v275_v27 }
   0xf   :  { %232 = vmatpush3.xpose.msra.mxu0 %v39_v2  ;;  %159 = vperm.xlu1 %242, %v156_v3   ;;  %v40_v6 = vmul.f32 %v38_v5, %v38_v5  ;;  %v149_v11 = vshrl.u32 %v148_v10, 7  ;;  %v173_v14 = vand.u32 127, %v148_v10  ;;  %v228_v15 = vld [vmem:[%s333_s3] ss:$0 sm:$0xff] }
  0x10   :  { %44 = vadd.xlane.f32.xlu0 %v43_v4 }
  0x11   :  { %v150_v13 = vsub.s32 0, %v149_v11  ;;  %vm176_vm2 = vcmp.ne.s32.totalorder %v149_v11, %v173_v14  ;;  %vm177_vm5 = vcmp.lt.s32.totalorder %v173_v14, 8 }
  0x12   :  { %234 = vmatmul.mubr.f32.vlgmr.msra.gmra.mxu0 %v38_v5 }
  0x14   :  { %41 = vadd.xlane.f32.xlu0 %v40_v6  ;;  %v182_v28 = vld [vmem:[#allocation2] sm:$0xff] }
  0x15   :  { %v191_v31 = vld [vmem:[#allocation3] sm:$0xff] }
  0x8a   :  { %v160_v12 = vpop.permute.xlu1 %159 }
  0x8b   :  { %vm165_vm3 = vcmp.eq.s32.totalorder %v160_v12, %v228_v15 }
  0x8c   :  { %vm178_vm4 = vmand %vm165_vm3, %vm176_vm2 }
  0x8d   :  { %vm180_vm7 = vmxor %vm165_vm3, %vm274_vm6 }
  0x8e   :  { %vm179_vm9 = vmand %vm178_vm4, %vm177_vm5 }
  0x8f   :  { %vm181_vm10 = vmand %vm180_vm7, %vm177_vm5 }
  0x99   :  { %v45_v7 = vpop.xlane.xlu0 %44 }
  0x9a   :  { %116 = vxpose.xlu1.b32.start.end [1/1] (short) (narrow) %v45_v7, 8 }
  0x9d   :  { %v42_v17 = vpop.xlane.xlu0 %41 }
  0xd2   :  { %v112_v8 = vpop.f32.mrf.mxu0 }
  0xd3   :  { %v153_v19 = vmul.f32 2.0, %v112_v8 }
  0xd4   :  { %v235_v9 = vpop.f32.mrf.mxu0 }
 0x116   :  { %v132_v16 = vpop.trf.xlu1 }
 0x117   :  { %v151_v18 = vrot.slane %v132_v16, %v150_v13 }
 0x119   :  { %v152_v20 = vadd.f32 %v151_v18, %v42_v17 }
 0x11b   :  { %v154_v21 = vsub.f32 %v152_v20, %v153_v19 }
 0x11d   :  { %v155_v22 = vmax.f32 %v154_v21, 0.0 }
 0x11f   :  { %v183_v23 = vsel %vm179_vm9, %v155_v22, 0.0  ;;  %v192_v25 = vsel %vm181_vm10, %v155_v22, inf }
 0x120   :  { %v185_v24 = vsel %vm184_vm8, %v183_v23, -inf  ;;  %v193_v26 = vsel %vm184_vm8, %v192_v25, inf }
 0x121   :  { %186 = vmax.xlane.f32.xlu0 %v185_v24 }
 0x125   :  { %194 = vmin.xlane.f32.xlu0 %v193_v26 }
 0x1aa   :  { %v187_v29 = vpop.xlane.xlu0 %186 }
 0x1ab   :  { %v188_v30 = vmax.f32 %v182_v28, %v187_v29 }
 0x1ad   :  { %190 = vst.msk [vmem:[#allocation2] sm:$0xff] %vm35_vm0, %v188_v30 }
 0x1ae   :  { %v195_v32 = vpop.xlane.xlu0 %194 }
 0x1af   :  { %v196_v33 = vmin.f32 %v191_v31, %v195_v32 }
 0x1b1   :  { %197 = vst.msk [vmem:[#allocation3] sm:$0xff] %vm35_vm0, %v196_v33 }
 0x1b4   :  { %v201_v34 = vld [vmem:[#allocation2] sm:$0xff] }
 0x1b5   :  { %244 = vrsqrt.f32 %v201_v34  ;;  %vm204_vm11 = vcmp.eq.f32.partialorder %v201_v34, inf  ;;  %v207_v38 = vand.u32 2147483648, %v201_v34  ;;  %vm206_vm12 = vcmp.eq.f32.partialorder %v201_v34, 0.0 }
 0x1b8   :  { %v210_v35 = vld [vmem:[#allocation3] sm:$0xff] }
 0x1b9   :  { %246 = vrsqrt.f32 %v210_v35  ;;  %vm213_vm13 = vcmp.eq.f32.partialorder %v210_v35, inf  ;;  %v216_v43 = vand.u32 2147483648, %v210_v35  ;;  %vm215_vm14 = vcmp.eq.f32.partialorder %v210_v35, 0.0 }
 0x1c2   :  { %v245_v36 = vpop.eup %244 }
 0x1c3   :  { %v203_v37 = vmul.f32 %v245_v36, %v201_v34 }
 0x1c5   :  { %v205_v39 = vsel %vm204_vm11, %v201_v34, %v203_v37 }
 0x1c6   :  { %v247_v40 = vpop.eup %246  ;;  %v208_v41 = vsel %vm206_vm12, %v207_v38, %v205_v39 }
 0x1c7   :  { %209 = vst.msk [vmem:[%s334_s4] sm:$0xff] %vm35_vm0, %v208_v41  ;;  %v212_v42 = vmul.f32 %v247_v40, %v210_v35 }
 0x1c9   :  { %v214_v44 = vsel %vm213_vm13, %v210_v35, %v212_v42 }
 0x1ca   :  { %v217_v45 = vsel %vm215_vm14, %v216_v43, %v214_v44 }
 0x1cb   :  { %218 = vst.msk [vmem:[%s335_s5] sm:$0xff] %vm35_vm0, %v217_v45 }
 0x1cc   :  { %227 = vsyncpa [#allocation5], 1 }

</bundles_post_ra>
